<compile_context>
chip_gen: v5e
topology: v5e:2x2
jax: 0.10.0
libtpu: 0.0.40
codegen_flags: <defaults>
</compile_context>

<pallas_src>
import jax
import jax.numpy as jnp
from jax.experimental import pallas as pl
from jax.experimental.pallas import tpu as pltpu

_ROW_TILE_MAX = 256          # sublane-axis tile (multiple of 8)
_PALLAS_MIN_BYTES = 1 << 20  # below this per view, plain JAX wins


def _round_up(x: int, m: int) -> int:
    return ((x + m - 1) // m) * m


def _cdiv(a: int, b: int) -> int:
    return (a + b - 1) // b


def _device_kind() -> str:
    try:
        return jax.devices()[0].device_kind.lower()
    except Exception:
        return ""


def _make_avgpool_kernel(num_views: int, hw: int, hw_tile: int, inv_hw: float):
    """Kernel reducing `num_views` same-shaped (row_tile, hw_tile) tiles."""
    num_chunks = hw_tile // 128
    needs_tail_mask = (hw % hw_tile) != 0

    def kernel(*refs):
        x_refs = refs[:num_views]
        o_refs = refs[num_views:2 * num_views]
        acc_refs = refs[2 * num_views:]

        k = pl.program_id(1)
        nk = pl.num_programs(1)

        @pl.when(k == 0)
        def _init():
            for acc in acc_refs:
                acc[...] = jnp.zeros_like(acc)

        def accumulate(masked: bool):
            for x, acc in zip(x_refs, acc_refs):
                xv = x[...].astype(jnp.float32)
                if masked:
                    # Zero out lanes past the true H*W extent (tail block only).
                    lane = jax.lax.broadcasted_iota(jnp.int32, xv.shape, 1)
                    xv = jnp.where(k * hw_tile + lane < hw, xv, 0.0)
                # Lane-dense accumulation: 128-lane chunk adds = pure VALU work;
                # acc is loaded/stored once per step.
                part = acc[...]
                for j in range(num_chunks):
                    part = part + xv[:, j * 128:(j + 1) * 128]
                acc[...] = part

        if needs_tail_mask:
            @pl.when(k < nk - 1)
            def _full_blocks():
                accumulate(False)

            @pl.when(k == nk - 1)
            def _tail_block():
                accumulate(True)
        else:
            accumulate(False)

        @pl.when(k == nk - 1)
        def _finalize():
            for o, acc in zip(o_refs, acc_refs):
                # Single cross-lane (XLU) reduce per row tile, then scale.
                total = jnp.sum(acc[...], axis=-1, keepdims=True)
                o[...] = (total * inv_hw).astype(o.dtype)

    return kernel


def _global_avg_pool_fused(xs):
    """xs: list of identically-shaped (N, C, H, W) arrays -> list of (N, C) means."""
    n, c, h, w = xs[0].shape
    for x in xs:
        assert x.shape == xs[0].shape and x.dtype == xs[0].dtype
    rows, hw = n * c, h * w
    nv = len(xs)
    dtype = xs[0].dtype
    itemsize = jnp.dtype(dtype).itemsize

    kind = _device_kind()
    # v5e: lower HBM BW + tighter default scoped VMEM -> 2048-lane tiles are
    # already near roofline. v6e/v7x: bigger steps amortize ~0.35us/step cost.
    hw_cap = 2048 if "v5" in kind else 4096
    # v5e/v6e are single-TensorCore: splitting the row axis there only adds
    # per-step overhead. On multi-TC chips make sure the "parallel" axis has
    # >= 2 blocks so both cores get work.
    multi_core_hint = not ("v5" in kind or "v6" in kind)

    row_tile = min(_ROW_TILE_MAX, _round_up(rows, 8))
    if multi_core_hint and rows > 8 and _cdiv(rows, row_tile) < 2:
        row_tile = max(8, _round_up(_cdiv(rows, 2), 8))
    hw_tile = min(hw_cap, _round_up(hw, 128))

    grid = (_cdiv(rows, row_tile), _cdiv(hw, hw_tile))

    # Free row-major reshape NCHW -> (N*C, H*W): no host-side padding copy.
    xs2 = [x.reshape(rows, hw) for x in xs]

    kernel = _make_avgpool_kernel(nv, hw, hw_tile, 1.0 / float(hw))

    in_specs = tuple(
        pl.BlockSpec((row_tile, hw_tile), lambda i, k: (i, k)) for _ in range(nv)
    )
    # Output block index ignores k -> stays resident across the reduction axis;
    # written back only when the row-tile index changes. Output is tiny, so the
    # last-dim=1 masked store cost is negligible.
    out_specs = tuple(
        pl.BlockSpec((row_tile, 1), lambda i, k: (i, 0)) for _ in range(nv)
    )
    out_shape = tuple(jax.ShapeDtypeStruct((rows, 1), dtype) for _ in range(nv))
    scratch_shapes = [pltpu.VMEM((row_tile, 128), jnp.float32) for _ in range(nv)]

    # Explicit VMEM budget: double-buffered inputs + outputs + scratch, +30%
    # headroom + fixed base for Mosaic internal scratch. Keeps the tile choice
    # from silently tripping a generation's scoped-VMEM default.
    in_bytes = nv * 2 * row_tile * hw_tile * itemsize
    out_bytes = nv * 2 * row_tile * itemsize
    scratch_bytes = nv * row_tile * 128 * 4
    vmem_budget = int(1.3 * (in_bytes + out_bytes + scratch_bytes)) + (8 << 20)

    cost = pl.CostEstimate(
        flops=nv * rows * hw,
        transcendentals=0,
        bytes_accessed=nv * (rows * hw * itemsize + rows * itemsize),
    )

    outs = pl.pallas_call(
        kernel,
        out_shape=out_shape,
        grid_spec=pltpu.PrefetchScalarGridSpec(
            num_scalar_prefetch=0,
            grid=grid,
            in_specs=in_specs,
            out_specs=out_specs,
            scratch_shapes=scratch_shapes,
        ),
        compiler_params=pltpu.CompilerParams(
            dimension_semantics=("parallel", "arbitrary"),
            vmem_limit_bytes=vmem_budget,
        ),
        cost_estimate=cost,
    )(*xs2)

    if not isinstance(outs, (tuple, list)):
        outs = (outs,)
    return [o.reshape(n, c) for o in outs]


def _too_small_for_pallas(x) -> bool:
    return x.size * jnp.dtype(x.dtype).itemsize < _PALLAS_MIN_BYTES


def global_avg_pool(x):
    """x: (N, C, H, W) -> (N, C) mean over H*W."""
    n, c, _, _ = x.shape
    if _too_small_for_pallas(x):
        # Launch/pipeline-warmup cost dwarfs the work; let XLA fuse it.
        return x.reshape(n, c, -1).mean(-1)
    return _global_avg_pool_fused([x])[0]


def avg_pooling_forward(x):
    """Mirror of AvgPooling.forward: dict of NCHW tensors -> dict of (N, C) means."""
    v1, v2 = x["view_1"], x["view_2"]
    if (v1.shape == v2.shape and v1.dtype == v2.dtype
            and not _too_small_for_pallas(v1)):
        o1, o2 = _global_avg_pool_fused([v1, v2])   # one fused pallas_call
    else:
        o1 = global_avg_pool(v1)
        o2 = global_avg_pool(v2)
    return {"view_1": o1, "view_2": o2}


if __name__ == "__main__":
    key = jax.random.PRNGKey(0)
    k1, k2, k3, k4 = jax.random.split(key, 4)

    # 1) Module-level forward at the small spec shape (auto path).
    view_1 = jax.random.normal(k1, (2, 4, 16, 16), dtype=jnp.float32)
    view_2 = jax.random.normal(k2, (2, 4, 16, 16), dtype=jnp.float32)
    out = avg_pooling_forward({"view_1": view_1, "view_2": view_2})
    out = jax.block_until_ready(out)
    ref1 = view_1.reshape(2, 4, -1).mean(-1)
    ref2 = view_2.reshape(2, 4, -1).mean(-1)
    assert out["view_1"].shape == (2, 4) and out["view_2"].shape == (2, 4)
    assert jnp.allclose(out["view_1"], ref1, atol=1e-5, rtol=1e-5)
    assert jnp.allclose(out["view_2"], ref2, atol=1e-5, rtol=1e-5)

    # 2) Exercise the Pallas kernel directly on the small shapes (grid (1, 1)).
    p1, p2 = _global_avg_pool_fused([view_1, view_2])
    p1, p2 = jax.block_until_ready((p1, p2))
    assert jnp.allclose(p1, ref1, atol=1e-5, rtol=1e-5)
    assert jnp.allclose(p2, ref2, atol=1e-5, rtol=1e-5)

    # 3) Pallas path with a non-128-multiple H*W tail, multi-step reduction and
    #    a partial row tile (validates in-kernel masking + OOB-write dropping).
    a = jax.random.normal(k3, (2, 12, 68, 68), dtype=jnp.float32)
    b = jax.random.normal(k4, (2, 12, 68, 68), dtype=jnp.float32)
    q1, q2 = _global_avg_pool_fused([a, b])
    q1, q2 = jax.block_until_ready((q1, q2))
    assert jnp.allclose(q1, a.reshape(2, 12, -1).mean(-1), atol=1e-4, rtol=1e-4)
    assert jnp.allclose(q2, b.reshape(2, 12, -1).mean(-1), atol=1e-4, rtol=1e-4)

    print("KERNEL_OK")
</pallas_src>

<mosaic_0001>
module attributes {stable_mosaic.version = 11 : i64} {
  func.func @kernel(%arg0: i32, %arg1: i32, %arg2: memref<8x256xf32, #tpu.memory_space<vmem>>, %arg3: memref<8x256xf32, #tpu.memory_space<vmem>>, %arg4: memref<8x1xf32, #tpu.memory_space<vmem>>, %arg5: memref<8x1xf32, #tpu.memory_space<vmem>>, %arg6: memref<8x128xf32, #tpu.memory_space<vmem>>, %arg7: memref<8x128xf32, #tpu.memory_space<vmem>>) attributes {dimension_semantics = [#tpu.dimension_semantics<parallel>, #tpu.dimension_semantics<arbitrary>], iteration_bounds = array<i64: 1, 1>, scalar_prefetch = 0 : i64, scratch_operands = 2 : i64, tpu.core_type = #tpu.core_type<tc>, window_params = [{transform_indices = @transform_0, window_bounds = array<i64: 8, 256>}, {transform_indices = @transform_1, window_bounds = array<i64: 8, 256>}, {transform_indices = @transform_2, window_bounds = array<i64: 8, 1>}, {transform_indices = @transform_3, window_bounds = array<i64: 8, 1>}]} {
    %c0_i32 = arith.constant 0 : i32
    %0 = arith.cmpi eq, %arg1, %c0_i32 : i32
    %1 = arith.extui %0 : i1 to i32
    %c0_i32_0 = arith.constant 0 : i32
    %2 = arith.cmpi ne, %1, %c0_i32_0 : i32
    scf.if %2 {
      %cst = arith.constant 0.000000e+00 : f32
      %20 = vector.broadcast %cst : f32 to vector<8x128xf32>
      %c0_14 = arith.constant 0 : index
      %c0_15 = arith.constant 0 : index
      %21 = vector.load %arg6[%c0_14, %c0_15] : memref<8x128xf32, #tpu.memory_space<vmem>>, vector<8x128xf32>
      tpu.vector_store %arg6[%c0_14, %c0_15], %20 {strides = array<i32>} : memref<8x128xf32, #tpu.memory_space<vmem>>, vector<8x128xf32>,
      %cst_16 = arith.constant 0.000000e+00 : f32
      %22 = vector.broadcast %cst_16 : f32 to vector<8x128xf32>
      %c0_17 = arith.constant 0 : index
      %c0_18 = arith.constant 0 : index
      %23 = vector.load %arg7[%c0_17, %c0_18] : memref<8x128xf32, #tpu.memory_space<vmem>>, vector<8x128xf32>
      tpu.vector_store %arg7[%c0_17, %c0_18], %22 {strides = array<i32>} : memref<8x128xf32, #tpu.memory_space<vmem>>, vector<8x128xf32>,
    } else {
    }
    %c0 = arith.constant 0 : index
    %c0_1 = arith.constant 0 : index
    %3 = vector.load %arg2[%c0, %c0_1] : memref<8x256xf32, #tpu.memory_space<vmem>>, vector<8x256xf32>
    %c0_2 = arith.constant 0 : index
    %c0_3 = arith.constant 0 : index
    %4 = vector.load %arg6[%c0_2, %c0_3] : memref<8x128xf32, #tpu.memory_space<vmem>>, vector<8x128xf32>
    %5 = vector.extract_strided_slice %3 {offsets = [0, 0], sizes = [8, 128], strides = [1, 1]} : vector<8x256xf32> to vector<8x128xf32>
    %6 = arith.addf %4, %5 : vector<8x128xf32>
    %7 = vector.extract_strided_slice %3 {offsets = [0, 128], sizes = [8, 128], strides = [1, 1]} : vector<8x256xf32> to vector<8x128xf32>
    %8 = arith.addf %6, %7 : vector<8x128xf32>
    %c0_4 = arith.constant 0 : index
    %c0_5 = arith.constant 0 : index
    %9 = vector.load %arg6[%c0_4, %c0_5] : memref<8x128xf32, #tpu.memory_space<vmem>>, vector<8x128xf32>
    tpu.vector_store %arg6[%c0_4, %c0_5], %8 {strides = array<i32>} : memref<8x128xf32, #tpu.memory_space<vmem>>, vector<8x128xf32>,
    %c0_6 = arith.constant 0 : index
    %c0_7 = arith.constant 0 : index
    %10 = vector.load %arg3[%c0_6, %c0_7] : memref<8x256xf32, #tpu.memory_space<vmem>>, vector<8x256xf32>
    %c0_8 = arith.constant 0 : index
    %c0_9 = arith.constant 0 : index
    %11 = vector.load %arg7[%c0_8, %c0_9] : memref<8x128xf32, #tpu.memory_space<vmem>>, vector<8x128xf32>
    %12 = vector.extract_strided_slice %10 {offsets = [0, 0], sizes = [8, 128], strides = [1, 1]} : vector<8x256xf32> to vector<8x128xf32>
    %13 = arith.addf %11, %12 : vector<8x128xf32>
    %14 = vector.extract_strided_slice %10 {offsets = [0, 128], sizes = [8, 128], strides = [1, 1]} : vector<8x256xf32> to vector<8x128xf32>
    %15 = arith.addf %13, %14 : vector<8x128xf32>
    %c0_10 = arith.constant 0 : index
    %c0_11 = arith.constant 0 : index
    %16 = vector.load %arg7[%c0_10, %c0_11] : memref<8x128xf32, #tpu.memory_space<vmem>>, vector<8x128xf32>
    tpu.vector_store %arg7[%c0_10, %c0_11], %15 {strides = array<i32>} : memref<8x128xf32, #tpu.memory_space<vmem>>, vector<8x128xf32>,
    %c0_i32_12 = arith.constant 0 : i32
    %17 = arith.cmpi eq, %arg1, %c0_i32_12 : i32
    %18 = arith.extui %17 : i1 to i32
    %c0_i32_13 = arith.constant 0 : i32
    %19 = arith.cmpi ne, %18, %c0_i32_13 : i32
    scf.if %19 {
      %c0_14 = arith.constant 0 : index
      %c0_15 = arith.constant 0 : index
      %20 = vector.load %arg6[%c0_14, %c0_15] : memref<8x128xf32, #tpu.memory_space<vmem>>, vector<8x128xf32>
      %cst = arith.constant dense<0.000000e+00> : vector<8xf32>
      %21 = vector.multi_reduction <add>, %20, %cst [1] : vector<8x128xf32> to vector<8xf32>
      %22 = vector.shape_cast %21 : vector<8xf32> to vector<8x1xf32>
      %cst_16 = arith.constant 3.906250e-03 : f32
      %23 = vector.broadcast %cst_16 : f32 to vector<8x1xf32>
      %24 = arith.mulf %22, %23 : vector<8x1xf32>
      %c0_17 = arith.constant 0 : index
      %c0_18 = arith.constant 0 : index
      %25 = vector.load %arg4[%c0_17, %c0_18] : memref<8x1xf32, #tpu.memory_space<vmem>>, vector<8x1xf32>
      tpu.vector_store %arg4[%c0_17, %c0_18], %24 {strides = array<i32>} : memref<8x1xf32, #tpu.memory_space<vmem>>, vector<8x1xf32>,
      %c0_19 = arith.constant 0 : index
      %c0_20 = arith.constant 0 : index
      %26 = vector.load %arg7[%c0_19, %c0_20] : memref<8x128xf32, #tpu.memory_space<vmem>>, vector<8x128xf32>
      %cst_21 = arith.constant dense<0.000000e+00> : vector<8xf32>
      %27 = vector.multi_reduction <add>, %26, %cst_21 [1] : vector<8x128xf32> to vector<8xf32>
      %28 = vector.shape_cast %27 : vector<8xf32> to vector<8x1xf32>
      %cst_22 = arith.constant 3.906250e-03 : f32
      %29 = vector.broadcast %cst_22 : f32 to vector<8x1xf32>
      %30 = arith.mulf %28, %29 : vector<8x1xf32>
      %c0_23 = arith.constant 0 : index
      %c0_24 = arith.constant 0 : index
      %31 = vector.load %arg5[%c0_23, %c0_24] : memref<8x1xf32, #tpu.memory_space<vmem>>, vector<8x1xf32>
      tpu.vector_store %arg5[%c0_23, %c0_24], %30 {strides = array<i32>} : memref<8x1xf32, #tpu.memory_space<vmem>>, vector<8x1xf32>,
    } else {
    }
    return
  }
  func.func @transform_0(%arg0: i32, %arg1: i32) -> (i32, i32) {
    %c0_i32 = arith.constant 0 : i32
    return %arg0, %arg1 : i32, i32
  }
  func.func @transform_1(%arg0: i32, %arg1: i32) -> (i32, i32) {
    %c0_i32 = arith.constant 0 : i32
    return %arg0, %arg1 : i32, i32
  }
  func.func @transform_2(%arg0: i32, %arg1: i32) -> (i32, i32) {
    %c0_i32 = arith.constant 0 : i32
    %c0_i32_0 = arith.constant 0 : i32
    return %arg0, %c0_i32 : i32, i32
  }
  func.func @transform_3(%arg0: i32, %arg1: i32) -> (i32, i32) {
    %c0_i32 = arith.constant 0 : i32
    %c0_i32_0 = arith.constant 0 : i32
    return %arg0, %c0_i32 : i32, i32
  }
}

</mosaic_0001>

<bundles_post_ra>
// kernel: tpu_custom_call.1
= control target key start
LH: loop header
LB: loop body
LE: loop exit
PB: predicated region body
PF: predicated region fallthrough
CT: control target
= control target key end

     0   :  { %9 = vsyncpa [#allocation5], 0  ;;  %s171_s0 = inlined_call_operand.hbm [shape: f32[8,256], index: 0, kind: input, shape index: {}]   ;;  %s172_s1 = inlined_call_operand.hbm [shape: f32[8,256], index: 1, kind: input, shape index: {}]   ;;  %s173_s2 = inlined_call_operand.vmem [shape: f32[8,1], index: 2, kind: output, shape index: {0}]   ;;  %s174_s3 = inlined_call_operand.vmem [shape: f32[8,1], index: 3, kind: output, shape index: {1}]  }
   0x1   :  { %s16_s14 = sshll.u32 %s171_s0, 4  ;;  %s17_s14 = int_to_ptr.hbm [resolvable:$true] %s16_s14 }
   0x2   :  { %10 = vsyncpa [#allocation7], 0  ;;  %s137_s15 = smov [#allocation4]   ;;  %s27_s19 = sshll.u32 %s172_s1, 4  ;;  %s28_s19 = int_to_ptr.hbm [resolvable:$true] %s27_s19 }
   0x3   :  { %s18_s16 = sshll.u32 %s137_s15, 4  ;;  %s138_s20 = smov [#allocation6]   ;;  %s19_s16 = int_to_ptr.vmem [resolvable:$true] %s18_s16 }
   0x4   :  { %21 = dma.hbm_to_vmem [thread:$0]  %s17_s14, 256, %s19_s16, [#allocation5]  }
   0x5   :  { %s29_s21 = sshll.u32 %s138_s20, 4  ;;  %s30_s21 = int_to_ptr.vmem [resolvable:$true] %s29_s21 }
   0x6   :  { %32 = dma.hbm_to_vmem [thread:$0]  %s28_s19, 256, %s30_s21, [#allocation7]  }
   0x7   :  { %133 = dma.done.wait [#allocation5], 256  }
   0x8   :  { %134 = vsyncadd [#allocation5], 4294967040 }
   0x9   :  { %135 = dma.done.wait [#allocation7], 256  }
   0xa   :  { %136 = vsyncadd [#allocation7], 4294967040  ;;  %v47_v0 = vld [vmem:[#allocation4] sm:$0xff]  ;;  %v48_v1 = vld [vmem:[#allocation4 + $0x8] sm:$0xff]  ;;  %vm66_vm0 = vcmask 7168  }
   0xb   :  { %v51_v2 = vadd.f32 %v48_v1, %v47_v0  ;;  %v53_v3 = vld [vmem:[#allocation6] sm:$0xff]  ;;  %v54_v4 = vld [vmem:[#allocation6 + $0x8] sm:$0xff] }
   0xc   :  { %v57_v5 = vadd.f32 %v54_v4, %v53_v3 }
   0xd   :  { %63 = vadd.xlane.f32.xlu0 %v51_v2 }
  0x15   :  { %69 = vadd.xlane.f32.xlu0 %v57_v5 }
  0x80   :  { %v64_v6 = vpop.xlane.xlu0 %63 }
  0x81   :  { %v65_v7 = vmul.f32 0.00390625, %v64_v6 }
  0x83   :  { %67 = vst.msk [vmem:[%s173_s2] sm:$0xff] %vm66_vm0, %v65_v7 }
  0x88   :  { %v70_v8 = vpop.xlane.xlu0 %69 }
  0x89   :  { %v71_v9 = vmul.f32 0.00390625, %v70_v8 }
  0x8b   :  { %72 = vst.msk [vmem:[%s174_s3] sm:$0xff] %vm66_vm0, %v71_v9 }
  0x8c   :  { %81 = vsyncpa [#allocation5], 1 }
  0x8d   :  { %82 = vsyncpa [#allocation7], 1 }

</bundles_post_ra>
